<compile_context>
chip_gen: v6e
topology: v6e:2x2x1
jax: 0.10.0
libtpu: 0.0.40
codegen_flags: <defaults>
</compile_context>

<pallas_src>
import functools

import jax
import jax.numpy as jnp
from jax.experimental import pallas as pl
from jax.experimental.pallas import tpu as pltpu

_HALO = 128  # width (lanes) of the causal-context input view; one aligned block


def _causal_conv_kernel(x_ref, halo_ref, w_ref, b_ref, o_ref, *,
                        kernel_size, time_tile, batch_tile):
    """One grid step == (batch-row block, time tile), NCT layout.

    x_ref    : (batch_tile, C_in, time_tile)  current time tile of the input
    halo_ref : (batch_tile, C_in, 128)        lane-aligned view of the previous
                                              tile's tail (clamped to block 0
                                              at tile 0, where it is zeroed)
    w_ref    : (C_out, K * C_in)              flattened taps,
                                              W[o, k*C_in + i] = w[o, i, k]
    b_ref    : (C_out, 1)                     bias (f32)
    o_ref    : (batch_tile, C_out, time_tile) output tile (time on lanes)
    """
    K = kernel_size
    Km1 = K - 1
    tt = pl.program_id(1)

    w = w_ref[...]
    bias = b_ref[...].astype(jnp.float32)

    if Km1 > 0:
        # Causal left context delivered as a clamped input view; zero it on the
        # first time tile of the sequence (fused causal left-padding).
        halo_all = halo_ref[...]
        halo_all = jnp.where(tt == 0, jnp.zeros_like(halo_all), halo_all)

    # Static loop over the folded batch rows (batch_tile is small); each row is
    # one (C_out, K*C_in) @ (K*C_in, time_tile) MXU matmul with f32 accumulate.
    for i in range(batch_tile):
        x_cur = x_ref[i]                                   # (C_in, time_tile)
        if Km1 == 0:
            x_col = x_cur                                  # K == 1: plain matmul
        else:
            # Left-extended tile: column j holds x[:, tile_start - (K-1) + j].
            x_ext = jnp.concatenate(
                [halo_all[i, :, _HALO - Km1:], x_cur], axis=-1)
            # im2col -> single MXU matmul with contraction dim K*C_in.
            # TODO(synk): on v5e (single vst slot) replace this concat-based
            # im2col with K accumulating per-tap matmuls / pltpu.roll shifts.
            x_col = jnp.concatenate(
                [x_ext[:, k:k + time_tile] for k in range(K)], axis=0)
        acc = jnp.dot(w, x_col, preferred_element_type=jnp.float32)
        o_ref[i] = (acc + bias).astype(o_ref.dtype)


def _round_up(x, m):
    return -(-x // m) * m


def _pick_batch_tile(B, C_in, C_out, K):
    """Fold a few batch rows per step when channel counts are tiny."""
    if C_out >= 128 or K * C_in >= 128:
        return 1
    bt = 1
    for d in range(1, min(B, 8) + 1):
        if B % d == 0:
            bt = d
    return bt


def _vmem_block_bytes(t_tile, C_in, C_out, K, b_tile, in_item, out_item):
    x_blk = b_tile * C_in * t_tile * in_item
    halo = b_tile * C_in * _HALO * in_item
    out_blk = b_tile * C_out * t_tile * out_item
    w = C_out * K * C_in * in_item
    im2col = b_tile * (K + 1) * C_in * (t_tile + _HALO) * in_item  # x_ext + x_col
    acc = b_tile * C_out * t_tile * 4
    # 2x for double-buffered pipelined operands.
    return 2 * (x_blk + halo + out_blk + w) + im2col + acc


def _pick_time_tile(T_pad, C_in, C_out, K, b_tile, in_item, out_item,
                    max_tile, vmem_budget):
    """Largest 128-multiple tile <= max_tile fitting the VMEM budget."""
    tile = _HALO
    for cand in (256, 512, 1024, 2048):
        if cand > max_tile or cand > T_pad:
            break
        if _vmem_block_bytes(cand, C_in, C_out, K, b_tile,
                             in_item, out_item) > vmem_budget:
            break
        tile = cand
    return tile


def causal_conv1d(x_nct, weight, bias, *, compute_dtype=None, time_tile=None,
                  batch_tile=None, max_time_tile=1024, buffer_count=None,
                  vmem_limit_bytes=32 * 1024 * 1024):
    """Causal Conv1d:  y = Conv1d(x, padding=K-1)[..., :T].

    x_nct  : (B, C_in, T)       PyTorch NCT layout (used directly, no transpose)
    weight : (C_out, C_in, K)   PyTorch Conv1d weight layout
    bias   : (C_out,)
    compute_dtype : matmul-operand / HBM-side dtype (e.g. jnp.bfloat16 on
                    v6e/v7x); accumulation is always f32.
    """
    B, C_in, T = x_nct.shape
    C_out, c_in_w, K = weight.shape
    assert c_in_w == C_in
    assert K - 1 <= _HALO, "kernel taps must fit in one 128-lane halo block"

    out_dtype = x_nct.dtype
    cdt = jnp.dtype(compute_dtype) if compute_dtype is not None else x_nct.dtype

    # HBM-side operands in the compute dtype (bf16 halves DMA traffic in the
    # memory-bound regime typical of WaveNet channel widths).
    x_c = x_nct.astype(cdt)
    # (C_out, C_in, K) -> (C_out, K, C_in) -> (C_out, K*C_in); row block k of
    # the contraction axis multiplies tap-k columns of the im2col operand.
    w_flat = jnp.transpose(weight, (0, 2, 1)).reshape(C_out, K * C_in).astype(cdt)
    b_2d = bias.reshape(C_out, 1).astype(jnp.float32)

    # Pad T only up to the next 128-lane multiple (often a no-op for audio
    # lengths); a pl.cdiv grid handles a partial last tile, so no padding up to
    # time_tile is needed and lane-dense stores are preserved.
    T_pad = _round_up(T, _HALO)
    if T_pad != T:
        x_c = jnp.pad(x_c, ((0, 0), (0, 0), (0, T_pad - T)))

    b_tile = (batch_tile if batch_tile is not None
              else _pick_batch_tile(B, C_in, C_out, K))
    assert B % b_tile == 0, "batch_tile must divide B"

    in_item = jnp.dtype(cdt).itemsize
    out_item = jnp.dtype(out_dtype).itemsize
    t_tile = (time_tile if time_tile is not None else
              _pick_time_tile(T_pad, C_in, C_out, K, b_tile, in_item, out_item,
                              max_time_tile, vmem_budget=24 * 1024 * 1024))
    assert t_tile % _HALO == 0, "time_tile must be a multiple of 128"
    assert t_tile <= T_pad, "time_tile must not exceed the padded time axis"
    n_tt = pl.cdiv(T_pad, t_tile)
    hbpt = t_tile // _HALO  # halo blocks per time tile

    kernel = functools.partial(_causal_conv_kernel, kernel_size=K,
                               time_tile=t_tile, batch_tile=b_tile)

    def _spec(shape, index_map):
        if buffer_count is None:
            return pl.BlockSpec(shape, index_map)
        return pl.BlockSpec(shape, index_map,
                            pipeline_mode=pl.Buffered(buffer_count))

    y_pad = pl.pallas_call(
        kernel,
        out_shape=jax.ShapeDtypeStruct((B, C_out, T_pad), out_dtype),
        grid_spec=pltpu.PrefetchScalarGridSpec(
            num_scalar_prefetch=0,
            grid=(B // b_tile, n_tt),
            in_specs=[
                # Current time tile (lane-dense, time on lanes).
                _spec((b_tile, C_in, t_tile), lambda b, t: (b, 0, t)),
                # Causal halo: the lane-aligned 128-column block immediately
                # before this tile (clamped to block 0 at t == 0; zeroed
                # in-kernel).  Same array as input 0, different view.
                pl.BlockSpec((b_tile, C_in, _HALO),
                             lambda b, t: (b, 0, jnp.maximum(t * hbpt - 1, 0))),
                pl.BlockSpec((C_out, K * C_in), lambda b, t: (0, 0)),
                pl.BlockSpec((C_out, 1), lambda b, t: (0, 0)),
            ],
            out_specs=_spec((b_tile, C_out, t_tile), lambda b, t: (b, 0, t)),
        ),
        compiler_params=pltpu.CompilerParams(
            # No cross-iteration state: batch AND time tiles are independent,
            # so both axes are megacore-shardable (helps B == 1 on v7x).
            dimension_semantics=("parallel", "parallel"),
            # Safe on every generation (<= physical VMEM on v5e/v6e/v7x).
            # TODO(synk): on v6e this can be raised to ~64 MiB together with
            # max_time_tile=2048 for very long sequences.
            vmem_limit_bytes=vmem_limit_bytes,
        ),
    )(x_c, x_c, w_flat, b_2d)

    return y_pad if T_pad == T else y_pad[:, :, :T]


def _reference_causal_conv1d(x_nct, weight, bias):
    """Pure-JAX reference (lax conv) for correctness check."""
    K = weight.shape[-1]
    x_pad = jnp.pad(x_nct, ((0, 0), (0, 0), (K - 1, 0)))
    y = jax.lax.conv_general_dilated(
        x_pad, weight,
        window_strides=(1,), padding="VALID",
        dimension_numbers=("NCH", "OIH", "NCH"))
    return y + bias[None, :, None]


if __name__ == "__main__":
    key = jax.random.PRNGKey(0)

    # Small shapes consistent with a WaveNet causal conv block.
    B, C_in, C_out, T, K = 2, 4, 8, 16, 3
    kx, kw, kb = jax.random.split(key, 3)
    x = jax.random.normal(kx, (B, C_in, T), dtype=jnp.float32)
    weight = jax.random.normal(kw, (C_out, C_in, K), dtype=jnp.float32) * 0.1
    bias = jax.random.normal(kb, (C_out,), dtype=jnp.float32) * 0.1

    # Single (padded, partial) time tile; batch folding kicks in (b_tile=2).
    y = jax.block_until_ready(causal_conv1d(x, weight, bias))
    y_ref = _reference_causal_conv1d(x, weight, bias)
    assert y.shape == (B, C_out, T)
    assert jnp.allclose(y, y_ref, atol=1e-5, rtol=1e-5), "single-tile mismatch"

    # Multi-time-tile halo path with a partial cdiv last tile:
    # T=300 -> T_pad=384, time_tile=256 -> tiles [0,256) and [256,384|512).
    T2 = 300
    x2 = jax.random.normal(jax.random.fold_in(key, 1), (B, C_in, T2),
                           dtype=jnp.float32)
    y2 = jax.block_until_ready(causal_conv1d(x2, weight, bias, time_tile=256))
    y2_ref = _reference_causal_conv1d(x2, weight, bias)
    assert y2.shape == (B, C_out, T2)
    assert jnp.allclose(y2, y2_ref, atol=1e-5, rtol=1e-5), "multi-tile mismatch"

    # bf16 HBM-side operands (f32 accumulation) -- looser tolerance expected.
    y3 = jax.block_until_ready(
        causal_conv1d(x2, weight, bias, compute_dtype=jnp.bfloat16,
                      time_tile=128))
    assert y3.shape == (B, C_out, T2)
    assert jnp.allclose(y3, y2_ref, atol=3e-2, rtol=3e-2), "bf16 mismatch"

    print("KERNEL_OK")
</pallas_src>

<mosaic_0001>
module attributes {stable_mosaic.version = 11 : i64} {
  func.func @_causal_conv_kernel(%arg0: i32, %arg1: i32, %arg2: memref<2x4x128xf32, #tpu.memory_space<vmem>>, %arg3: memref<2x4x128xf32, #tpu.memory_space<vmem>>, %arg4: memref<8x12xf32, #tpu.memory_space<vmem>>, %arg5: memref<8x1xf32, #tpu.memory_space<vmem>>, %arg6: memref<2x8x128xf32, #tpu.memory_space<vmem>>) attributes {dimension_semantics = [#tpu.dimension_semantics<parallel>, #tpu.dimension_semantics<parallel>], iteration_bounds = array<i64: 1, 1>, scalar_prefetch = 0 : i64, scratch_operands = 0 : i64, tpu.core_type = #tpu.core_type<tc>, window_params = [{transform_indices = @transform_0, window_bounds = array<i64: 2, 4, 128>}, {transform_indices = @transform_1, window_bounds = array<i64: 2, 4, 128>}, {pipeline_mode = #tpu.pipeline_mode<synchronous>, transform_indices = @transform_2, window_bounds = array<i64: 8, 12>}, {pipeline_mode = #tpu.pipeline_mode<synchronous>, transform_indices = @transform_3, window_bounds = array<i64: 8, 1>}, {transform_indices = @transform_4, window_bounds = array<i64: 2, 8, 128>}]} {
    %c0 = arith.constant 0 : index
    %c0_0 = arith.constant 0 : index
    %0 = vector.load %arg4[%c0, %c0_0] : memref<8x12xf32, #tpu.memory_space<vmem>>, vector<8x12xf32>
    %c0_1 = arith.constant 0 : index
    %c0_2 = arith.constant 0 : index
    %1 = vector.load %arg5[%c0_1, %c0_2] : memref<8x1xf32, #tpu.memory_space<vmem>>, vector<8x1xf32>
    %c0_3 = arith.constant 0 : index
    %c0_4 = arith.constant 0 : index
    %c0_5 = arith.constant 0 : index
    %2 = vector.load %arg3[%c0_3, %c0_4, %c0_5] : memref<2x4x128xf32, #tpu.memory_space<vmem>>, vector<2x4x128xf32>
    %c0_i32 = arith.constant 0 : i32
    %3 = arith.cmpi eq, %arg1, %c0_i32 : i32
    %cst = arith.constant 0.000000e+00 : f32
    %4 = vector.broadcast %cst : f32 to vector<2x4x128xf32>
    %5 = arith.select %3, %4, %2 : vector<2x4x128xf32>
    %c0_6 = arith.constant 0 : index
    %c0_7 = arith.constant 0 : index
    %c0_8 = arith.constant 0 : index
    %6 = vector.load %arg2[%c0_6, %c0_7, %c0_8] : memref<2x4x128xf32, #tpu.memory_space<vmem>>, vector<1x4x128xf32>
    %7 = vector.shape_cast %6 : vector<1x4x128xf32> to vector<4x128xf32>
    %8 = vector.extract_strided_slice %5 {offsets = [0, 0, 126], sizes = [1, 4, 2], strides = [1, 1, 1]} : vector<2x4x128xf32> to vector<1x4x2xf32>
    %9 = vector.shape_cast %8 : vector<1x4x2xf32> to vector<4x2xf32>
    %10 = tpu.concatenate %9, %7 in 1 : vector<4x2xf32>, vector<4x128xf32> -> vector<4x130xf32>
    %11 = vector.extract_strided_slice %10 {offsets = [0, 0], sizes = [4, 128], strides = [1, 1]} : vector<4x130xf32> to vector<4x128xf32>
    %12 = vector.extract_strided_slice %10 {offsets = [0, 1], sizes = [4, 128], strides = [1, 1]} : vector<4x130xf32> to vector<4x128xf32>
    %13 = vector.extract_strided_slice %10 {offsets = [0, 2], sizes = [4, 128], strides = [1, 1]} : vector<4x130xf32> to vector<4x128xf32>
    %14 = tpu.concatenate %11, %12, %13 in 0 : vector<4x128xf32>, vector<4x128xf32>, vector<4x128xf32> -> vector<12x128xf32>
    %cst_9 = arith.constant dense<0.000000e+00> : vector<8x128xf32>
    %15 = tpu.matmul %0, %14, %cst_9 {dimension_numbers = #tpu.dot_dimension_numbers<[1], [0], [0], [1], [0, 0, 1, 1], [], []>} : vector<8x12xf32>, vector<12x128xf32>, vector<8x128xf32> -> vector<8x128xf32>
    %16 = vector.broadcast %1 : vector<8x1xf32> to vector<8x128xf32>
    %17 = arith.addf %15, %16 : vector<8x128xf32>
    %c0_10 = arith.constant 0 : index
    %c0_11 = arith.constant 0 : index
    %c0_12 = arith.constant 0 : index
    %18 = vector.load %arg6[%c0_10, %c0_11, %c0_12] : memref<2x8x128xf32, #tpu.memory_space<vmem>>, vector<1x8x128xf32>
    %19 = vector.shape_cast %18 : vector<1x8x128xf32> to vector<8x128xf32>
    %20 = vector.shape_cast %17 : vector<8x128xf32> to vector<1x8x128xf32>
    tpu.vector_store %arg6[%c0_10, %c0_11, %c0_12], %20 {strides = array<i32>} : memref<2x8x128xf32, #tpu.memory_space<vmem>>, vector<1x8x128xf32>,
    %c1 = arith.constant 1 : index
    %c0_13 = arith.constant 0 : index
    %c0_14 = arith.constant 0 : index
    %21 = vector.load %arg2[%c1, %c0_13, %c0_14] : memref<2x4x128xf32, #tpu.memory_space<vmem>>, vector<1x4x128xf32>
    %22 = vector.shape_cast %21 : vector<1x4x128xf32> to vector<4x128xf32>
    %23 = vector.extract_strided_slice %5 {offsets = [1, 0, 126], sizes = [1, 4, 2], strides = [1, 1, 1]} : vector<2x4x128xf32> to vector<1x4x2xf32>
    %24 = vector.shape_cast %23 : vector<1x4x2xf32> to vector<4x2xf32>
    %25 = tpu.concatenate %24, %22 in 1 : vector<4x2xf32>, vector<4x128xf32> -> vector<4x130xf32>
    %26 = vector.extract_strided_slice %25 {offsets = [0, 0], sizes = [4, 128], strides = [1, 1]} : vector<4x130xf32> to vector<4x128xf32>
    %27 = vector.extract_strided_slice %25 {offsets = [0, 1], sizes = [4, 128], strides = [1, 1]} : vector<4x130xf32> to vector<4x128xf32>
    %28 = vector.extract_strided_slice %25 {offsets = [0, 2], sizes = [4, 128], strides = [1, 1]} : vector<4x130xf32> to vector<4x128xf32>
    %29 = tpu.concatenate %26, %27, %28 in 0 : vector<4x128xf32>, vector<4x128xf32>, vector<4x128xf32> -> vector<12x128xf32>
    %cst_15 = arith.constant dense<0.000000e+00> : vector<8x128xf32>
    %30 = tpu.matmul %0, %29, %cst_15 {dimension_numbers = #tpu.dot_dimension_numbers<[1], [0], [0], [1], [0, 0, 1, 1], [], []>} : vector<8x12xf32>, vector<12x128xf32>, vector<8x128xf32> -> vector<8x128xf32>
    %31 = vector.broadcast %1 : vector<8x1xf32> to vector<8x128xf32>
    %32 = arith.addf %30, %31 : vector<8x128xf32>
    %c1_16 = arith.constant 1 : index
    %c0_17 = arith.constant 0 : index
    %c0_18 = arith.constant 0 : index
    %33 = vector.load %arg6[%c1_16, %c0_17, %c0_18] : memref<2x8x128xf32, #tpu.memory_space<vmem>>, vector<1x8x128xf32>
    %34 = vector.shape_cast %33 : vector<1x8x128xf32> to vector<8x128xf32>
    %35 = vector.shape_cast %32 : vector<8x128xf32> to vector<1x8x128xf32>
    tpu.vector_store %arg6[%c1_16, %c0_17, %c0_18], %35 {strides = array<i32>} : memref<2x8x128xf32, #tpu.memory_space<vmem>>, vector<1x8x128xf32>,
    return
  }
  func.func @transform_0(%arg0: i32, %arg1: i32) -> (i32, i32, i32) {
    %c0_i32 = arith.constant 0 : i32
    %c0_i32_0 = arith.constant 0 : i32
    return %arg0, %c0_i32, %arg1 : i32, i32, i32
  }
  func.func @transform_1(%arg0: i32, %arg1: i32) -> (i32, i32, i32) {
    %c1_i32 = arith.constant 1 : i32
    %0 = arith.muli %arg1, %c1_i32 : i32
    %c1_i32_0 = arith.constant 1 : i32
    %1 = arith.subi %0, %c1_i32_0 : i32
    %c0_i32 = arith.constant 0 : i32
    %2 = arith.maxsi %1, %c0_i32 : i32
    %c0_i32_1 = arith.constant 0 : i32
    %c0_i32_2 = arith.constant 0 : i32
    return %arg0, %c0_i32_1, %2 : i32, i32, i32
  }
  func.func @transform_2(%arg0: i32, %arg1: i32) -> (i32, i32) {
    %c0_i32 = arith.constant 0 : i32
    %c0_i32_0 = arith.constant 0 : i32
    %c0_i32_1 = arith.constant 0 : i32
    return %c0_i32, %c0_i32_0 : i32, i32
  }
  func.func @transform_3(%arg0: i32, %arg1: i32) -> (i32, i32) {
    %c0_i32 = arith.constant 0 : i32
    %c0_i32_0 = arith.constant 0 : i32
    %c0_i32_1 = arith.constant 0 : i32
    return %c0_i32, %c0_i32_0 : i32, i32
  }
  func.func @transform_4(%arg0: i32, %arg1: i32) -> (i32, i32, i32) {
    %c0_i32 = arith.constant 0 : i32
    %c0_i32_0 = arith.constant 0 : i32
    return %arg0, %c0_i32, %arg1 : i32, i32, i32
  }
}

</mosaic_0001>

<bundles_post_ra>
// kernel: tpu_custom_call.1
= control target key start
LH: loop header
LB: loop body
LE: loop exit
PB: predicated region body
PF: predicated region fallthrough
CT: control target
= control target key end

     0   :  { %9 = vsyncpa [#allocation3], 0  ;;  %s464_s0 = inlined_call_operand.vmem [shape: f32[2,4,128], index: 0, kind: input, shape index: {}]   ;;  %s465_s1 = inlined_call_operand.hbm [shape: f32[2,4,128], index: 1, kind: input, shape index: {}]   ;;  %s466_s2 = inlined_call_operand.hbm [shape: f32[8,12], index: 2, kind: input, shape index: {}]   ;;  %s467_s3 = inlined_call_operand.vmem [shape: f32[8,1], index: 3, kind: input, shape index: {}]   ;;  %s468_s4 = inlined_call_operand.hbm [shape: f32[2,8,128], index: 4, kind: output, shape index: {}]  }
   0x1   :  { %10 = vsyncpa [#allocation6], 0 }
   0x2   :  { %11 = vsyncpa [#allocation4], 0  ;;  %s404_s15 = smov [#allocation2]  }
   0x3   :  { %s24_s16 = sshll.u32 %s404_s15, 4  ;;  %s25_s16 = int_to_ptr.vmem [resolvable:$true] %s24_s16 }
   0x4   :  { %s346_s17 = scalar_lea.vmem %s25_s16, 128  ;;  %p351_p1 = scmp.lt.s32.totalorder %s25_s16, %s25_s16 }
   0x5   :  { %p347_p0 = scmp.ne.s32.totalorder %s25_s16, %s346_s17  ;;  %p352_p2 = scmp.lt.s32.totalorder %s346_s17, %s346_s17 }
   0x7   :  { %p353_p3 = por %p352_p2, %p351_p1 }
   0x9   :  { %p354_p4 = pnand %p353_p3, %p347_p0 }
   0xb   :  { %357 = shalt.err (!%p354_p4)
}
   0xc   :  { %s405_s18 = smov 64   ;;  %s406_s19 = smov 4  }
   0xd   :  { %30 = dma.hbm_to_vmem [thread:$0]  %s465_s1, 128, %s25_s16, [#allocation3], %s405_s18, %s405_s18, %s406_s19  }
   0xe   :  { %s407_s22 = smov [#allocation5]  }
   0xf   :  { %s37_s23 = sshll.u32 %s407_s22, 4  ;;  %s38_s23 = int_to_ptr.vmem [resolvable:$true] %s37_s23 }
  0x10   :  { %s366_s24 = scalar_lea.vmem %s38_s23, 128  ;;  %p371_p6 = scmp.lt.s32.totalorder %s38_s23, %s38_s23 }
  0x11   :  { %p367_p5 = scmp.ne.s32.totalorder %s38_s23, %s366_s24  ;;  %p372_p7 = scmp.lt.s32.totalorder %s366_s24, %s366_s24 }
  0x13   :  { %p373_p8 = por %p372_p7, %p371_p6 }
  0x15   :  { %p374_p9 = pnand %p373_p8, %p367_p5 }
  0x17   :  { %377 = shalt.err (!%p374_p9)
}
  0x18   :  { %40 = dma.hbm_to_vmem [thread:$0]  %s466_s2, 128, %s38_s23, [#allocation6]  }
  0x19   :  { %398 = dma.done.wait [#allocation3], 128  }
  0x1a   :  { %399 = vsyncadd [#allocation3], 4294967168 }
  0x1b   :  { %400 = dma.done.wait [#allocation6], 128  }
  0x1c   :  { %401 = vsyncadd [#allocation6], 4294967168  ;;  %v408_v0 = vmov 0.0   ;;  %s409_s1 = smov 2   ;;  %v295_v1 = vld [vmem:[%s464_s0 + $0x4] sm:$0xf] }
  0x1d   :  { %304 = vmatprep.subr.mxu0 %v408_v0  ;;  %311 = vmatprep.subr.mxu1 %v408_v0  ;;  %v62_v2 = vld [vmem:[%s464_s0] sm:$0xf]  ;;  %vm71_vm0 = vcmask 15360   ;;  %s410_s2 = smov 126   ;;  %vm411_vm1 = vmmov 0   ;;  %v412_v10 = vmov 0  }
  0x1e   :  { %332 = vrot.lane.b32.xlu0 %v408_v0, %s409_s1  ;;  %180 = vrot.lane.b32.xlu1 %v295_v1, %s409_s1  ;;  %s413_s0 = smov 127   ;;  %v53_v15 = vld [vmem:[%s467_s3] sm:$0xff]  ;;  %vm87_vm2 = vcmask 1031168   ;;  %vm89_vm3 = vcmask 1043456   ;;  %vm80_vm4 = vcmask 1039360   ;;  %v52_v25 = vld [vmem:[#allocation5] sm:$0xff] }
  0x1f   :  { %308 = vmatprep.mubr.msk.f32.mxu0 %vm411_vm1, %v408_v0  ;;  %315 = vmatprep.mubr.msk.f32.mxu1 %vm411_vm1, %v408_v0  ;;  %vm96_vm5 = vcmask 97280   ;;  %s414_s3 = smov [#allocation7]  }
  0x20   :  { %336 = vset.pattern.permute.xlu1 %v412_v10  ;;  %337 = vset.pattern.permute.xlu0 %v412_v10  ;;  %s278_s7 = sshll.u32 %s414_s3, 4  ;;  %s279_s7 = int_to_ptr.vmem [resolvable:$true] %s278_s7 }
  0x21   :  { %s378_s8 = scalar_lea.vmem %s279_s7, 256  ;;  %p383_p11 = scmp.lt.s32.totalorder %s279_s7, %s279_s7 }
  0x22   :  { %68 = vrot.lane.b32.xlu0 %v62_v2, %s409_s1  ;;  %p379_p10 = scmp.ne.s32.totalorder %s279_s7, %s378_s8  ;;  %p384_p12 = scmp.lt.s32.totalorder %s378_s8, %s378_s8 }
  0x24   :  { %p385_p13 = por %p384_p12, %p383_p11 }
  0x26   :  { %p386_p0 = pnand %p385_p13, %p379_p10 }
  0x90   :  { %v333_v3 = vpop.permute.xlu0 %332  ;;  %v181_v7 = vpop.permute.xlu1 %180 }
  0x91   :  { %v334_v4 = vunpack.i.l.bf16 %v333_v3  ;;  %v335_v8 = vunpack.i.h.bf16 %v333_v3  ;;  %v186_v13 = vrot.slane %v181_v7, 4 }
  0x93   :  { %v183_v9 = vsel %vm71_vm0, %v335_v8, %v181_v7 }
  0x94   :  { %v69_v5 = vpop.permute.xlu0 %68  ;;  %v185_v14 = vrot.slane %v183_v9, 4 }
  0x95   :  { %85 = vrot.lane.b32.xlu0 %v69_v5, %s410_s2  ;;  %v72_v6 = vsel %vm71_vm0, %v334_v4, %v69_v5  ;;  %v75_v11 = vrot.slane %v69_v5, 4 }
  0x96   :  { %83 = vrot.lane.b32.xlu1 %v72_v6, %s410_s2  ;;  %v74_v12 = vrot.slane %v72_v6, 4 }
  0x99   :  { %195 = vrot.lane.b32.xlu0 %v181_v7, %s410_s2 }
  0x9a   :  { %193 = vrot.lane.b32.xlu1 %v183_v9, %s410_s2 }
  0x9d   :  { %78 = vrot.lane.b32.xlu0 %v75_v11, %s413_s0 }
  0x9e   :  { %76 = vrot.lane.b32.xlu1 %v74_v12, %s413_s0 }
  0xa1   :  { %189 = vrot.lane.b32.xlu0 %v186_v13, %s413_s0 }
  0xa2   :  { %187 = vrot.lane.b32.xlu1 %v185_v14, %s413_s0 }
  0xa6   :  { %93 = vperm.xlu1 %336, %v53_v15  }
 0x107   :  { %v86_v16 = vpop.permute.xlu0 %85 }
 0x108   :  { %v84_v17 = vpop.permute.xlu1 %83 }
 0x109   :  { %v88_v18 = vsel %vm87_vm2, %v84_v17, %v86_v16 }
 0x10a   :  { %305 = vmatpush3.msk.msra.mxu0 %vm89_vm3, %v88_v18 }
 0x10b   :  { %v196_v19 = vpop.permute.xlu0 %195  ;;  %306 = vmatprep.subr.mxu0 %v408_v0 }
 0x10c   :  { %v194_v20 = vpop.permute.xlu1 %193 }
 0x10d   :  { %v197_v21 = vsel %vm87_vm2, %v194_v20, %v196_v19 }
 0x10e   :  { %312 = vmatpush3.msk.msra.mxu1 %vm89_vm3, %v197_v21 }
 0x10f   :  { %v79_v22 = vpop.permute.xlu0 %78  ;;  %313 = vmatprep.subr.mxu1 %v408_v0 }
 0x110   :  { %v77_v23 = vpop.permute.xlu1 %76 }
 0x111   :  { %v81_v24 = vsel %vm80_vm4, %v77_v23, %v79_v22 }
 0x112   :  { %v90_v26 = vsel %vm89_vm3, %v72_v6, %v81_v24 }
 0x113   :  { %307 = vmatpush3.msra.mxu0 %v90_v26  ;;  %v190_v27 = vpop.permute.xlu0 %189 }
 0x114   :  { %v188_v28 = vpop.permute.xlu1 %187  ;;  %309 = vmatmul.mubr.msk.f32.vlgmr.msra.gmra.mxu0 %vm96_vm5, %v52_v25 }
 0x115   :  { %v191_v29 = vsel %vm80_vm4, %v188_v28, %v190_v27 }
 0x116   :  { %v198_v30 = vsel %vm89_vm3, %v183_v9, %v191_v29 }
 0x117   :  { %314 = vmatpush3.msra.mxu1 %v198_v30 }
 0x118   :  { %316 = vmatmul.mubr.msk.f32.vlgmr.msra.gmra.mxu1 %vm96_vm5, %v52_v25 }
 0x121   :  { %v94_v31 = vpop.permute.xlu1 %93 }
 0x1d4   :  { %v168_v32 = vpop.f32.mrf.mxu0 }
 0x1d5   :  { %v169_v33 = vadd.f32 %v168_v32, %v94_v31 }
 0x1d6   :  { %v310_v34 = vpop.f32.mrf.mxu0 }
 0x1d7   :  { %172 = vst [vmem:[#allocation7] sm:$0xff] %v169_v33 }
 0x1d8   :  { %v267_v35 = vpop.f32.mrf.mxu1 }
 0x1d9   :  { %v268_v36 = vadd.f32 %v267_v35, %v94_v31 }
 0x1da   :  { %v317_v37 = vpop.f32.mrf.mxu1 }
 0x1db   :  { %272 = vst [vmem:[#allocation7 + $0x8] sm:$0xff] %v268_v36 }
 0x1dc   :  { %389 = shalt.err (!%p386_p0)
}
 0x1dd   :  { %s415_s9 = smov 128   ;;  %s416_s10 = smov 8  }
 0x1de   :  { %284 = dma.vmem_to_hbm [thread:$0]  %s279_s7, 256, %s468_s4, [#allocation4], %s415_s9, %s415_s9, %s416_s10  }
 0x1df   :  { %402 = dma.done.wait [#allocation4], 256  }
 0x1e0   :  { %403 = vsyncadd [#allocation4], 4294967040 }
 0x1e1   :  { %288 = vsyncpa [#allocation3], 1 }
 0x1e2   :  { %289 = vsyncpa [#allocation6], 1 }
 0x1e3   :  { %290 = vsyncpa [#allocation4], 1 }

</bundles_post_ra>
